<compile_context>
chip_gen: v5e
topology: v5e:2x2
jax: 0.10.0
libtpu: 0.0.40
codegen_flags: <defaults>
</compile_context>

<pallas_src>
import jax
import jax.numpy as jnp
from jax.experimental import pallas as pl
from jax.experimental.pallas import tpu as pltpu

_LANE = 128
_SUBLANE = 8
_VREG_ELEMS = _SUBLANE * _LANE          # 1024 f32 elements per vreg
_MAX_LANE_WIDTH = 32768                 # widest lane-dense slab we try
_MAX_BLOCK_BYTES = 4 << 20              # ~4 MiB per grid-step block (x or out)


def _affine_kernel(wb_ref, x_ref, o_ref):
    # wb_ref: SMEM f32[2] = [w, b];  x_ref / o_ref: VMEM (block_rows, L) block.
    w = wb_ref[0]
    b = wb_ref[1]
    x = x_ref[...]
    # f32 FMA on the VPU (v5e has no bf16 VPU path); cast back to out dtype.
    o_ref[...] = (x.astype(jnp.float32) * w + b).astype(o_ref.dtype)


def _pick_slab_shape(padded):
    """Choose (rows, L): L a wide multiple of 128, rows a multiple of 8."""
    lane = _LANE
    while lane * 2 <= _MAX_LANE_WIDTH and padded % (_SUBLANE * lane * 2) == 0:
        lane *= 2
    rows = padded // lane
    return rows, lane


def linear_forward(x, weight, bias):
    """nn.Linear(1, 1) forward: x @ weight.T + bias, computed as x * w + b.

    x:      [batch, 1] float32
    weight: [1, 1]     float32 (PyTorch convention)
    bias:   [1]        float32
    returns [batch, 1] float32
    """
    batch, in_dim = x.shape
    out_dim = weight.shape[0]
    assert in_dim == 1 and out_dim == 1, "specialized for nn.Linear(1, 1)"

    itemsize = jnp.dtype(x.dtype).itemsize

    # Pad the flat batch up to full-vreg granularity (multiple of 8*128).
    padded = pl.cdiv(batch, _VREG_ELEMS) * _VREG_ELEMS
    x_flat = x.reshape(batch)
    made_copy = padded != batch
    if made_copy:
        # TODO(synk): for huge, misaligned batches this jnp.pad is an extra
        # HBM pass; require lane-aligned batch from the caller to avoid it.
        x_flat = jnp.pad(x_flat, (0, padded - batch))

    rows, lane = _pick_slab_shape(padded)
    x2d = x_flat.reshape(rows, lane)

    # Block rows: multiple of 8, block bytes <= ~4 MiB, covering rows if small.
    block_rows_cap = max(_SUBLANE,
                         (_MAX_BLOCK_BYTES // (lane * itemsize)) // _SUBLANE * _SUBLANE)
    block_rows = min(rows, block_rows_cap)
    grid = (pl.cdiv(rows, block_rows),)

    # [w, b] as one tiny f32 SMEM array (32-bit scalar path on all gens).
    wb = jnp.stack([weight.reshape(()), bias.reshape(())]).astype(jnp.float32)

    block_bytes = block_rows * lane * itemsize
    # input + output, each double-buffered, plus slack; sized for v7x's 64 MiB.
    vmem_limit = min(max(4 * block_bytes + (1 << 20), 4 << 20), 32 << 20)

    call_kwargs = {}
    if made_copy:
        # x2d is a fresh padded buffer owned by this wrapper -> safe to donate.
        call_kwargs["input_output_aliases"] = {1: 0}

    out2d = pl.pallas_call(
        _affine_kernel,
        out_shape=jax.ShapeDtypeStruct((rows, lane), x.dtype),
        grid=grid,
        in_specs=[
            pl.BlockSpec(memory_space=pltpu.MemorySpace.SMEM),      # [w, b]
            pl.BlockSpec((block_rows, lane), lambda i: (i, 0)),     # x block
        ],
        out_specs=pl.BlockSpec((block_rows, lane), lambda i: (i, 0)),
        compiler_params=pltpu.CompilerParams(
            dimension_semantics=("parallel",),   # lets v7x split across 2 TCs
            vmem_limit_bytes=vmem_limit,
        ),
        cost_estimate=pl.CostEstimate(
            flops=2 * padded,
            transcendentals=0,
            bytes_accessed=2 * padded * itemsize,
        ),
        **call_kwargs,
    )(wb, x2d)

    # Un-pad and restore the [batch, 1] PyTorch output layout.
    return out2d.reshape(padded)[:batch].reshape(batch, out_dim)


if __name__ == "__main__":
    key = jax.random.PRNGKey(0)
    kx, kw, kb = jax.random.split(key, 3)

    # Shapes implied by the module: input_dim = 1, output_dim = 1, batch = 256.
    batch, input_dim, output_dim = 256, 1, 1

    x = jax.random.uniform(kx, (batch, input_dim), dtype=jnp.float32)

    # Deterministic synthetic parameters (same shapes as nn.Linear(1, 1)).
    weight = jax.random.normal(kw, (output_dim, input_dim), dtype=jnp.float32)
    bias = jax.random.normal(kb, (output_dim,), dtype=jnp.float32)

    out = linear_forward(x, weight, bias)
    out = jax.block_until_ready(out)

    # Reference check against plain JAX.
    ref = x @ weight.T + bias
    assert out.shape == (batch, output_dim)
    assert jnp.allclose(out, ref, atol=1e-5, rtol=1e-5)

    print("KERNEL_OK")
</pallas_src>

<mosaic_0001>
module attributes {stable_mosaic.version = 11 : i64} {
  func.func @_affine_kernel(%arg0: i32, %arg1: memref<2xf32, #tpu.memory_space<smem>>, %arg2: memref<8x128xf32, #tpu.memory_space<vmem>>, %arg3: memref<8x128xf32, #tpu.memory_space<vmem>>) attributes {dimension_semantics = [#tpu.dimension_semantics<parallel>], iteration_bounds = array<i64: 1>, scalar_prefetch = 0 : i64, scratch_operands = 0 : i64, tpu.core_type = #tpu.core_type<tc>, window_params = [{transform_indices = @transform_0, window_bounds = array<i64: 2>}, {transform_indices = @transform_1, window_bounds = array<i64: 8, 128>}, {transform_indices = @transform_2, window_bounds = array<i64: 8, 128>}]} {
    %c0 = arith.constant 0 : index
    %0 = memref.load %arg1[%c0] : memref<2xf32, #tpu.memory_space<smem>>
    %c1 = arith.constant 1 : index
    %1 = memref.load %arg1[%c1] : memref<2xf32, #tpu.memory_space<smem>>
    %c0_0 = arith.constant 0 : index
    %c0_1 = arith.constant 0 : index
    %2 = vector.load %arg2[%c0_0, %c0_1] : memref<8x128xf32, #tpu.memory_space<vmem>>, vector<8x128xf32>
    %3 = vector.broadcast %0 : f32 to vector<8x128xf32>
    %4 = arith.mulf %2, %3 : vector<8x128xf32>
    %5 = vector.broadcast %1 : f32 to vector<8x128xf32>
    %6 = arith.addf %4, %5 : vector<8x128xf32>
    %c0_2 = arith.constant 0 : index
    %c0_3 = arith.constant 0 : index
    %7 = vector.load %arg3[%c0_2, %c0_3] : memref<8x128xf32, #tpu.memory_space<vmem>>, vector<8x128xf32>
    tpu.vector_store %arg3[%c0_2, %c0_3], %6 {strides = array<i32>} : memref<8x128xf32, #tpu.memory_space<vmem>>, vector<8x128xf32>,
    return
  }
  func.func @transform_0(%arg0: i32) -> i32 {
    %c0_i32 = arith.constant 0 : i32
    %c0_i32_0 = arith.constant 0 : i32
    return %c0_i32 : i32
  }
  func.func @transform_1(%arg0: i32) -> (i32, i32) {
    %c0_i32 = arith.constant 0 : i32
    %c0_i32_0 = arith.constant 0 : i32
    return %arg0, %c0_i32 : i32, i32
  }
  func.func @transform_2(%arg0: i32) -> (i32, i32) {
    %c0_i32 = arith.constant 0 : i32
    %c0_i32_0 = arith.constant 0 : i32
    return %arg0, %c0_i32 : i32, i32
  }
}

</mosaic_0001>

<bundles_post_ra>
// kernel: tpu_custom_call.1
= control target key start
LH: loop header
LB: loop body
LE: loop exit
PB: predicated region body
PF: predicated region fallthrough
CT: control target
= control target key end

     0   :  { %7 = vsyncpa [#allocation5], 0  ;;  %s162_s0 = inlined_call_operand.vmem [shape: f32[2], index: 0, kind: input, shape index: {}]   ;;  %s163_s1 = inlined_call_operand.hbm [shape: f32[8,128], index: 1, kind: input, shape index: {}, may-alias: {1,2}]   ;;  %s164_s2 = inlined_call_operand.hbm [shape: f32[8,128], index: 2, kind: output, shape index: {}, may-alias: {1,2}]  }
   0x1   :  { %8 = vsyncpa [#allocation3], 0 }
   0x2   :  { %9 = vsyncpa [#allocation4], 0  ;;  %s15_s11 = sshll.u32 %s162_s0, 4  ;;  %s24_s14 = sshll.u32 %s163_s1, 4  ;;  %s16_s11 = int_to_ptr.vmem [resolvable:$true] %s15_s11  ;;  %s25_s14 = int_to_ptr.hbm [resolvable:$true] %s24_s14 }
   0x3   :  { %s135_s15 = smov [#allocation2]   ;;  %s136_s16 = smov [#allocation6]  }
   0x4   :  { %18 = dma.vmem_to_smem %s16_s11, 16, %s135_s15, [#allocation5]  }
   0x5   :  { %s26_s17 = sshll.u32 %s136_s16, 4  ;;  %s27_s17 = int_to_ptr.vmem [resolvable:$true] %s26_s17 }
   0x6   :  { %29 = dma.hbm_to_vmem [thread:$0]  %s25_s14, 128, %s27_s17, [#allocation3]  }
   0x7   :  { %129 = dma.done.wait [#allocation5], 16  }
   0x8   :  { %130 = vsyncadd [#allocation5], 4294967280 }
   0x9   :  { %131 = dma.done.wait [#allocation3], 128  }
   0xa   :  { %132 = vsyncadd [#allocation3], 4294967168 }
   0xb   :  { %38 = sfence }
   0xc   :  { %s39_s18 = sld [smem:[#allocation2]]  ;;  %v41_v0 = vld [vmem:[#allocation6] sm:$0xff]  ;;  %s137_s0 = smov [#allocation7]  }
   0xd   :  { %s65_s19 = sld [smem:[#allocation2 + $0x1]]  ;;  %s52_s20 = sshll.u32 %s137_s0, 4  ;;  %s53_s20 = int_to_ptr.vmem [resolvable:$true] %s52_s20 }
   0xe   :  { %s54_s22 = sshll.u32 %s164_s2, 4  ;;  %s55_s22 = int_to_ptr.hbm [resolvable:$true] %s54_s22 }
  0x12   :  { %v42_v1 = vstv %s39_s18 }
  0x13   :  { %v43_v2 = vmul.f32 %v42_v1, %v41_v0  ;;  %v44_v3 = vstv %s65_s19 }
  0x15   :  { %v45_v4 = vadd.f32 %v44_v3, %v43_v2 }
  0x17   :  { %46 = vst [vmem:[#allocation7] sm:$0xff] %v45_v4 }
  0x18   :  { %57 = dma.vmem_to_hbm [thread:$0]  %s53_s20, 128, %s55_s22, [#allocation4]  }
  0x19   :  { %133 = dma.done.wait [#allocation4], 128  }
  0x1a   :  { %134 = vsyncadd [#allocation4], 4294967168 }
  0x1b   :  { %62 = vsyncpa [#allocation3], 1 }
  0x1c   :  { %63 = vsyncpa [#allocation4], 1 }
  0x1d   :  { %64 = vsyncpa [#allocation5], 1 }

</bundles_post_ra>
